<compile_context>
chip_gen: v7x
topology: tpu7x:2x2x1
jax: 0.10.0
libtpu: 0.0.40
codegen_flags: <defaults>
</compile_context>

<pallas_src>
import functools

import jax
import jax.numpy as jnp
import numpy as np
from jax.experimental import pallas as pl
from jax.experimental.pallas import tpu as pltpu

_BN_EPS = 1e-5
_LANE = 128
_SUBLANE = 8


def _round_up(x, m):
    return (x + m - 1) // m * m


def _conv_bn_relu_kernel(x_ref, w_ref, b_ref, o_ref, *, kh_taps, tm, sh, wos,
                         activate):
    # x_ref : (1, HQ, sh*WoS, Kc)    compute_dtype  KW-unfolded, row-pair-packed
    # w_ref : (KH, Kc, Coutp)        compute_dtype  BN-folded conv weight
    # b_ref : (1, Coutp)             f32            BN-folded bias
    # o_ref : (1, TM, WoS, Coutp)    out_dtype
    ht = pl.program_id(1)
    row0 = ht * tm                                  # output-row tile origin
    m = tm * wos

    acc = None
    for kh in range(kh_taps):                       # fused im2col along KH
        dq, r = divmod(kh, sh)                      # row-pair / sub-row select
        lhs = x_ref[0, pl.ds(row0 + dq, tm), r * wos:(r + 1) * wos, :]
        lhs2d = lhs.reshape(m, lhs.shape[-1])       # layout-free: WoS % 8 == 0
        part = jnp.dot(lhs2d, w_ref[kh], preferred_element_type=jnp.float32)
        acc = part if acc is None else acc + part

    y = acc + b_ref[...]                            # folded BatchNorm bias
    if activate:
        y = jnp.maximum(y, 0.0)                     # ReLU
    o_ref[0] = y.reshape(tm, wos, -1).astype(o_ref.dtype)


def sha_conv_block_nhwc(x_nhwc, weight, gamma, beta, running_mean, running_var,
                        stride=1, padding=1, activate=True,
                        compute_dtype=jnp.bfloat16, out_dtype=None,
                        rows_per_tile=1024, keep_padded=False):
    """Conv2d(3x3, bias=False) + BatchNorm2d(eval) + optional ReLU, NHWC.

    compute_dtype: activation/weight dtype fed to the MXU (bf16 default,
      f32 accumulation).  Pass jnp.float32 for exact f32 semantics.
    out_dtype: kernel output dtype (defaults to compute_dtype so chained
      ShaConvBlocks stay in bf16 end to end).
    keep_padded=True returns the (N, Ho_pad, WoS, Coutp) block layout
      (no output slice pass) for block-to-block chaining.
    """
    N, H, W, Cin = x_nhwc.shape
    Cout, Cin_w, KH, KW = weight.shape
    assert Cin == Cin_w, "groups != 1 not supported"
    sh, sw = (stride, stride) if isinstance(stride, int) else tuple(stride)
    ph, pw = (padding, padding) if isinstance(padding, int) else tuple(padding)
    out_dtype = compute_dtype if out_dtype is None else out_dtype

    Hp, Wp = H + 2 * ph, W + 2 * pw
    Ho = (Hp - KH) // sh + 1
    Wo = (Wp - KW) // sw + 1
    Kc = KW * Cin

    # ---- wrapper glue: pad + KW-direction unfold (exact in W, incl. stride) --
    xp = jnp.pad(x_nhwc, ((0, 0), (ph, ph), (pw, pw), (0, 0)))
    xp = xp.astype(compute_dtype)
    cols = [xp[:, :, kw: kw + (Wo - 1) * sw + 1: sw, :] for kw in range(KW)]
    xcol = jnp.concatenate(cols, axis=-1)            # (N, Hp, Wo, Kc)

    # ---- tiling: TM output rows per grid step, sublane-aligned W -------------
    WoS = _round_up(Wo, _SUBLANE)
    tm_max = max(1, min(Ho, rows_per_tile // WoS))
    tm = tm_max
    for cand in range(tm_max, 0, -1):                # prefer an exact divisor
        if Ho % cand == 0:
            tm = cand
            break
    if tm < max(1, tm_max // 2):                     # divisor too small: pad Ho
        tm = tm_max
    n_ht = pl.cdiv(Ho, tm)
    Ho_pad = n_ht * tm

    # Pack `sh` adjacent padded rows into the sublane dim so every kh tap is a
    # contiguous aligned window (exact in-kernel stride-H decimation).
    HQ = Ho_pad + (KH - 1) // sh                     # row-pair rows the grid reads
    HX = HQ * sh
    xcol = jnp.pad(xcol, ((0, 0), (0, max(0, HX - Hp)),
                          (0, WoS - Wo), (0, 0)))[:, :HX]
    xm = xcol.reshape(N, HQ, sh * WoS, Kc)

    # ---- fold BatchNorm (running stats) into weight + bias -------------------
    scale = gamma.astype(jnp.float32) * jax.lax.rsqrt(
        running_var.astype(jnp.float32) + _BN_EPS)
    bias = beta.astype(jnp.float32) - running_mean.astype(jnp.float32) * scale
    # (Cout, Cin, KH, KW) -> (KH, KW, Cin, Cout) -> (KH, KW*Cin, Cout)
    w_r = jnp.transpose(weight.astype(jnp.float32), (2, 3, 1, 0))
    w_r = w_r.reshape(KH, Kc, Cout) * scale[None, None, :]

    Coutp = _round_up(Cout, _LANE)                   # lane-dense output stores
    if Coutp != Cout:
        w_r = jnp.pad(w_r, ((0, 0), (0, 0), (0, Coutp - Cout)))
        bias = jnp.pad(bias, ((0, Coutp - Cout),))
    w_r = w_r.astype(compute_dtype)
    bias = bias.reshape(1, Coutp)

    kernel = functools.partial(_conv_bn_relu_kernel, kh_taps=KH, tm=tm, sh=sh,
                               wos=WoS, activate=activate)

    # ---- VMEM budget (double-buffered blocks, no extra x2) / cost estimate ---
    isz = jnp.dtype(compute_dtype).itemsize
    osz = jnp.dtype(out_dtype).itemsize
    x_blk = HQ * sh * WoS * _round_up(Kc, _LANE) * isz
    w_blk = KH * _round_up(Kc, _SUBLANE) * Coutp * isz
    o_blk = tm * WoS * Coutp * osz
    acc_blk = tm * WoS * Coutp * 4                   # f32 accumulator headroom
    need = 2 * (x_blk + w_blk + Coutp * 4 + o_blk) + acc_blk + (2 << 20)
    try:
        vmem_cap = int(pltpu.get_tpu_info().vmem_capacity_bytes)
    except Exception:                                # pragma: no cover
        vmem_cap = 64 * 2**20                        # conservative (v7x part)
    vmem_limit = int(min(max(need, 16 * 2**20), 0.7 * vmem_cap))

    flops = 2 * N * Ho_pad * WoS * KH * Kc * Coutp
    bytes_accessed = (N * HX * WoS * Kc * isz + KH * Kc * Coutp * isz
                      + Coutp * 4 + N * Ho_pad * WoS * Coutp * osz)

    out = pl.pallas_call(
        kernel,
        out_shape=jax.ShapeDtypeStruct((N, Ho_pad, WoS, Coutp), out_dtype),
        grid=(N, n_ht),
        in_specs=[
            pl.BlockSpec((1, HQ, sh * WoS, Kc), lambda n, t: (n, 0, 0, 0)),
            pl.BlockSpec((KH, Kc, Coutp), lambda n, t: (0, 0, 0)),
            pl.BlockSpec((1, Coutp), lambda n, t: (0, 0)),
        ],
        out_specs=pl.BlockSpec((1, tm, WoS, Coutp), lambda n, t: (n, t, 0, 0)),
        compiler_params=pltpu.CompilerParams(
            dimension_semantics=("parallel", "parallel"),
            vmem_limit_bytes=vmem_limit),
        cost_estimate=pl.CostEstimate(flops=int(flops), transcendentals=0,
                                      bytes_accessed=int(bytes_accessed)),
    )(xm, w_r, bias)

    if keep_padded:
        return out                                    # (N, Ho_pad, WoS, Coutp)
    return out[:, :Ho, :Wo, :Cout]


def sha_conv_block(x_nchw, weight, gamma, beta, running_mean, running_var,
                   stride=1, padding=1, activate=True, **kwargs):
    """NCHW wrapper matching PyTorch ShaConvBlock.forward (eval-mode BN)."""
    x_nhwc = jnp.transpose(x_nchw, (0, 2, 3, 1))
    y = sha_conv_block_nhwc(x_nhwc, weight, gamma, beta, running_mean,
                            running_var, stride=stride, padding=padding,
                            activate=activate, **kwargs)
    return jnp.transpose(y, (0, 3, 1, 2)).astype(x_nchw.dtype)


def _reference(x, w, gamma, beta, mean, var, stride=1, padding=1):
    y = jax.lax.conv_general_dilated(
        x, w, window_strides=(stride, stride),
        padding=((padding, padding), (padding, padding)),
        dimension_numbers=("NCHW", "OIHW", "NCHW"))
    y = (y - mean[None, :, None, None]) / jnp.sqrt(
        var[None, :, None, None] + _BN_EPS)
    y = y * gamma[None, :, None, None] + beta[None, :, None, None]
    return jnp.maximum(y, 0.0)


if __name__ == "__main__":
    key = jax.random.PRNGKey(0)
    k_x, k_w, k_g, k_b, k_m, k_v = jax.random.split(key, 6)

    # Small shapes consistent with the module: Conv2d(4 -> 8, k=3, s=1, p=1)
    N, Cin, H, W = 2, 4, 16, 16
    Cout, KH, KW = 8, 3, 3

    x = jax.random.normal(k_x, (N, Cin, H, W), dtype=jnp.float32)
    weight = 0.1 * jax.random.normal(k_w, (Cout, Cin, KH, KW), dtype=jnp.float32)
    gamma = 1.0 + 0.1 * jax.random.normal(k_g, (Cout,), dtype=jnp.float32)
    beta = 0.1 * jax.random.normal(k_b, (Cout,), dtype=jnp.float32)
    running_mean = 0.1 * jax.random.normal(k_m, (Cout,), dtype=jnp.float32)
    running_var = 1.0 + 0.1 * jax.random.uniform(k_v, (Cout,), dtype=jnp.float32)

    # 1) Stride-1 shared 3x3 block (the common ShaResNet case).
    out1 = sha_conv_block(x, weight, gamma, beta, running_mean, running_var,
                          stride=1, padding=1)
    out1 = jax.block_until_ready(out1)
    ref1 = _reference(x, weight, gamma, beta, running_mean, running_var,
                      stride=1, padding=1)
    np.testing.assert_allclose(np.asarray(out1, dtype=np.float32),
                               np.asarray(ref1), rtol=2e-2, atol=2e-2)

    # 2) Stride-2 downsampling block with a small rows_per_tile so the
    #    (batch, row-tile) grid and the in-kernel H decimation are exercised.
    out2 = sha_conv_block(x, weight, gamma, beta, running_mean, running_var,
                          stride=2, padding=1, rows_per_tile=32)
    out2 = jax.block_until_ready(out2)
    ref2 = _reference(x, weight, gamma, beta, running_mean, running_var,
                      stride=2, padding=1)
    np.testing.assert_allclose(np.asarray(out2, dtype=np.float32),
                               np.asarray(ref2), rtol=2e-2, atol=2e-2)

    print("KERNEL_OK")
</pallas_src>

<mosaic_0001>
module attributes {stable_mosaic.version = 11 : i64} {
  func.func @_conv_bn_relu_kernel(%arg0: i32, %arg1: i32, %arg2: memref<1x18x16x12xbf16, #tpu.memory_space<vmem>>, %arg3: memref<3x12x128xbf16, #tpu.memory_space<vmem>>, %arg4: memref<1x128xf32, #tpu.memory_space<vmem>>, %arg5: memref<1x16x16x128xbf16, #tpu.memory_space<vmem>>) attributes {dimension_semantics = [#tpu.dimension_semantics<parallel>, #tpu.dimension_semantics<parallel>], iteration_bounds = array<i64: 2, 1>, scalar_prefetch = 0 : i64, scratch_operands = 0 : i64, tpu.core_type = #tpu.core_type<tc>, window_params = [{transform_indices = @transform_0, window_bounds = array<i64: 1, 18, 16, 12>}, {pipeline_mode = #tpu.pipeline_mode<synchronous>, transform_indices = @transform_1, window_bounds = array<i64: 3, 12, 128>}, {pipeline_mode = #tpu.pipeline_mode<synchronous>, transform_indices = @transform_2, window_bounds = array<i64: 1, 128>}, {transform_indices = @transform_3, window_bounds = array<i64: 1, 16, 16, 128>}]} {
    %c16_i32 = arith.constant 16 : i32
    %0 = arith.muli %arg1, %c16_i32 : i32
    %c0_i32 = arith.constant 0 : i32
    %1 = arith.addi %0, %c0_i32 : i32
    %c0 = arith.constant 0 : index
    %2 = arith.index_cast %1 : i32 to index
    %c0_0 = arith.constant 0 : index
    %c0_1 = arith.constant 0 : index
    %3 = vector.load %arg2[%c0, %2, %c0_0, %c0_1] : memref<1x18x16x12xbf16, #tpu.memory_space<vmem>>, vector<1x16x16x12xbf16>
    %4 = vector.shape_cast %3 : vector<1x16x16x12xbf16> to vector<16x16x12xbf16>
    %5 = vector.shape_cast %4 : vector<16x16x12xbf16> to vector<256x12xbf16>
    %c0_2 = arith.constant 0 : index
    %c0_3 = arith.constant 0 : index
    %c0_4 = arith.constant 0 : index
    %6 = vector.load %arg3[%c0_2, %c0_3, %c0_4] : memref<3x12x128xbf16, #tpu.memory_space<vmem>>, vector<1x12x128xbf16>
    %7 = vector.shape_cast %6 : vector<1x12x128xbf16> to vector<12x128xbf16>
    %cst = arith.constant dense<0.000000e+00> : vector<256x128xf32>
    %8 = tpu.matmul %5, %7, %cst {dimension_numbers = #tpu.dot_dimension_numbers<[1], [0], [0], [1], [0, 0, 1, 1], [], []>} : vector<256x12xbf16>, vector<12x128xbf16>, vector<256x128xf32> -> vector<256x128xf32>
    %c1_i32 = arith.constant 1 : i32
    %9 = arith.addi %0, %c1_i32 : i32
    %c0_5 = arith.constant 0 : index
    %10 = arith.index_cast %9 : i32 to index
    %c0_6 = arith.constant 0 : index
    %c0_7 = arith.constant 0 : index
    %11 = vector.load %arg2[%c0_5, %10, %c0_6, %c0_7] : memref<1x18x16x12xbf16, #tpu.memory_space<vmem>>, vector<1x16x16x12xbf16>
    %12 = vector.shape_cast %11 : vector<1x16x16x12xbf16> to vector<16x16x12xbf16>
    %13 = vector.shape_cast %12 : vector<16x16x12xbf16> to vector<256x12xbf16>
    %c1 = arith.constant 1 : index
    %c0_8 = arith.constant 0 : index
    %c0_9 = arith.constant 0 : index
    %14 = vector.load %arg3[%c1, %c0_8, %c0_9] : memref<3x12x128xbf16, #tpu.memory_space<vmem>>, vector<1x12x128xbf16>
    %15 = vector.shape_cast %14 : vector<1x12x128xbf16> to vector<12x128xbf16>
    %cst_10 = arith.constant dense<0.000000e+00> : vector<256x128xf32>
    %16 = tpu.matmul %13, %15, %cst_10 {dimension_numbers = #tpu.dot_dimension_numbers<[1], [0], [0], [1], [0, 0, 1, 1], [], []>} : vector<256x12xbf16>, vector<12x128xbf16>, vector<256x128xf32> -> vector<256x128xf32>
    %17 = arith.addf %8, %16 : vector<256x128xf32>
    %c2_i32 = arith.constant 2 : i32
    %18 = arith.addi %0, %c2_i32 : i32
    %c0_11 = arith.constant 0 : index
    %19 = arith.index_cast %18 : i32 to index
    %c0_12 = arith.constant 0 : index
    %c0_13 = arith.constant 0 : index
    %20 = vector.load %arg2[%c0_11, %19, %c0_12, %c0_13] : memref<1x18x16x12xbf16, #tpu.memory_space<vmem>>, vector<1x16x16x12xbf16>
    %21 = vector.shape_cast %20 : vector<1x16x16x12xbf16> to vector<16x16x12xbf16>
    %22 = vector.shape_cast %21 : vector<16x16x12xbf16> to vector<256x12xbf16>
    %c2 = arith.constant 2 : index
    %c0_14 = arith.constant 0 : index
    %c0_15 = arith.constant 0 : index
    %23 = vector.load %arg3[%c2, %c0_14, %c0_15] : memref<3x12x128xbf16, #tpu.memory_space<vmem>>, vector<1x12x128xbf16>
    %24 = vector.shape_cast %23 : vector<1x12x128xbf16> to vector<12x128xbf16>
    %cst_16 = arith.constant dense<0.000000e+00> : vector<256x128xf32>
    %25 = tpu.matmul %22, %24, %cst_16 {dimension_numbers = #tpu.dot_dimension_numbers<[1], [0], [0], [1], [0, 0, 1, 1], [], []>} : vector<256x12xbf16>, vector<12x128xbf16>, vector<256x128xf32> -> vector<256x128xf32>
    %26 = arith.addf %17, %25 : vector<256x128xf32>
    %c0_17 = arith.constant 0 : index
    %c0_18 = arith.constant 0 : index
    %27 = vector.load %arg4[%c0_17, %c0_18] : memref<1x128xf32, #tpu.memory_space<vmem>>, vector<1x128xf32>
    %28 = vector.broadcast %27 : vector<1x128xf32> to vector<256x128xf32>
    %29 = arith.addf %26, %28 : vector<256x128xf32>
    %cst_19 = arith.constant 0.000000e+00 : f32
    %30 = vector.broadcast %cst_19 : f32 to vector<256x128xf32>
    %31 = arith.maximumf %29, %30 : vector<256x128xf32>
    %32 = vector.shape_cast %31 : vector<256x128xf32> to vector<16x16x128xf32>
    %33 = arith.truncf %32 : vector<16x16x128xf32> to vector<16x16x128xbf16>
    %c0_20 = arith.constant 0 : index
    %c0_21 = arith.constant 0 : index
    %c0_22 = arith.constant 0 : index
    %c0_23 = arith.constant 0 : index
    %34 = vector.load %arg5[%c0_20, %c0_21, %c0_22, %c0_23] : memref<1x16x16x128xbf16, #tpu.memory_space<vmem>>, vector<1x16x16x128xbf16>
    %35 = vector.shape_cast %34 : vector<1x16x16x128xbf16> to vector<16x16x128xbf16>
    %36 = vector.shape_cast %33 : vector<16x16x128xbf16> to vector<1x16x16x128xbf16>
    tpu.vector_store %arg5[%c0_20, %c0_21, %c0_22, %c0_23], %36 {strides = array<i32>} : memref<1x16x16x128xbf16, #tpu.memory_space<vmem>>, vector<1x16x16x128xbf16>,
    return
  }
  func.func @transform_0(%arg0: i32, %arg1: i32) -> (i32, i32, i32, i32) {
    %c0_i32 = arith.constant 0 : i32
    %c0_i32_0 = arith.constant 0 : i32
    %c0_i32_1 = arith.constant 0 : i32
    %c0_i32_2 = arith.constant 0 : i32
    return %arg0, %c0_i32, %c0_i32_0, %c0_i32_1 : i32, i32, i32, i32
  }
  func.func @transform_1(%arg0: i32, %arg1: i32) -> (i32, i32, i32) {
    %c0_i32 = arith.constant 0 : i32
    %c0_i32_0 = arith.constant 0 : i32
    %c0_i32_1 = arith.constant 0 : i32
    %c0_i32_2 = arith.constant 0 : i32
    return %c0_i32, %c0_i32_0, %c0_i32_1 : i32, i32, i32
  }
  func.func @transform_2(%arg0: i32, %arg1: i32) -> (i32, i32) {
    %c0_i32 = arith.constant 0 : i32
    %c0_i32_0 = arith.constant 0 : i32
    %c0_i32_1 = arith.constant 0 : i32
    return %c0_i32, %c0_i32_0 : i32, i32
  }
  func.func @transform_3(%arg0: i32, %arg1: i32) -> (i32, i32, i32, i32) {
    %c0_i32 = arith.constant 0 : i32
    %c0_i32_0 = arith.constant 0 : i32
    %c0_i32_1 = arith.constant 0 : i32
    return %arg0, %arg1, %c0_i32, %c0_i32_0 : i32, i32, i32, i32
  }
}

</mosaic_0001>

<bundles_post_ra>
// kernel: tpu_custom_call.1
= control target key start
LH: loop header
LB: loop body
LE: loop exit
PB: predicated region body
PF: predicated region fallthrough
CT: control target
= control target key end

     0   :  { %8 = vsyncpa [#allocation3], 0  ;;  %s2633_s0 = inlined_call_operand.vmem [shape: bf16[2,18,16,12], index: 0, kind: input, shape index: {}]   ;;  %s2634_s1 = inlined_call_operand.vmem [shape: bf16[3,12,128], index: 1, kind: input, shape index: {}]   ;;  %s2635_s2 = inlined_call_operand.vmem [shape: f32[1,128], index: 2, kind: input, shape index: {}]   ;;  %s2636_s3 = inlined_call_operand.hbm [shape: bf16[2,16,16,128], index: 3, kind: output, shape index: {}]  }
   0x1   :  { %10 = vsyncpa [#allocation3 + $0x1], 0  ;;  %s2332_s12 = smov 0   ;;  %s2334_s13 = smov 0  }
   0x2   :  { %s2336_s14 = smov 0   ;;  %s2338_s15 = smov 0  }
   0x3   :  { %s2340_s16 = smov 0   ;;  %s2342_s17 = smov 0  }
   0x4 LB: > { %s1557_s18 = sadd.s32 4294967295, %s2307_s17   ;;  %s1558_s19 = sadd.s32 4294967294, %s2307_s17   ;;  %s2307_s17 = sphi %s2342_s17, %s16_s17   ;;  %s2303_s16 = sphi %s2340_s16, %s2643_s16   ;;  %s2299_s15 = sphi %s2338_s15, %s2642_s15   ;;  %s2295_s14 = sphi %s2336_s14, %s2641_s14   ;;  %s2291_s13 = sphi %s2334_s13, %s2640_s13   ;;  %s2287_s12 = sphi %s2332_s12, %s2639_s12  }
   0x5   : > { %s28_s20 = sadd.s32 1, %s2303_s16  ;;  %s105_s21 = sadd.s32 1, %s2295_s14 }
   0x6   : > { %p30_p0 = scmp.ge.s32.totalorder %s28_s20, 2  ;;  %p115_p1 = scmp.ne.s32.totalorder %s2295_s14, %s2291_s13 }
   0x7   : > { %p116_p2 = scmp.eq.s32.totalorder %s1557_s18, 1  ;;  %p121_p3 = scmp.ne.s32.totalorder %s2291_s13, %s2287_s12 }
   0x8   : > { %s2645_s20 = smov (%p30_p0, %s28_s20), 0  ;;  %p122_p5 = scmp.eq.s32.totalorder %s1558_s19, 1 }
   0x9   : > { %p2372_p4 = por %p116_p2, %p115_p1  ;;  %s100_s23 = ssub.s32 %s2303_s16, %s2645_s20 }
   0xa   : > { %p1561_p6 = scmp.ge.s32.totalorder %s2307_s17, 1  ;;  %p103_p7 = scmp.eq.s32.totalorder %s100_s23, 0 }
   0xb   : > { %p2379_p8 = por %p122_p5, %p121_p3  ;;  %p154_p9 = scmp.lt.s32.totalorder %s2307_s17, 3 }
   0xc   : > { %s2385_s25 = scalar_select %p103_p7, %s2295_s14, %s105_s21  }
   0xd   : > { %p155_p10 = pnand %p1561_p6, %p154_p9 }
   0xe   : > { %v2178_v0 = vld [vmem:[%s2634_s1 + $0x8] sm:$0x3f] (!%p155_p10)   ;;  %vm396_vm0 = vcmask (!%p155_p10), 1045504   ;;  %p178_p11 = scmp.lt.s32.totalorder (!%p155_p10), %s2299_s15, 1  ;;  %v2179_v1 = vld [vmem:[%s2634_s1] sm:$0x3f] (!%p155_p10)  }
   0xf   : > { %158 = sbr.rel (%p155_p10) target bundleno = 355 (0x163), region = 32  ;;  %2116 = vmatprep.subr.msk.bf16.mxu1 (!%p155_p10), %vm396_vm0, %v2178_v0  ;;  %v398_v2 = vsel (!%p155_p10), %vm396_vm0, %v2178_v0, 0  ;;  %v2182_v3 = vld [vmem:[%s2634_s1 + $0x10] sm:$0x3f] (!%p155_p10)   ;;  %2117 = vmatprep.subr.msk.bf16.mxu0 (!%p155_p10), %vm396_vm0, %v2179_v1  ;;  %v695_v4 = vsel (!%p155_p10), %vm396_vm0, %v2179_v1, 0  ;;  %vm347_vm1 = vcmask (!%p155_p10), 97280  }
  0x10   : > { %1949 = vmatpush3.bf16.msra.mxu1 (!%p155_p10), %v398_v2  ;;  %1983 = vmatpush3.bf16.msra.mxu0 (!%p155_p10), %v695_v4  ;;  %v1031_v9 = vsel (!%p155_p10), %vm396_vm0, %v2182_v3, 0  ;;  %s175_s18 = sand.u32 (!%p155_p10), 1, %s2291_s13   ;;  %s1801_s23 = sshll.u32 (!%p155_p10), %s2299_s15, 11 }
  0x11   : > { %2118 = vmatprep.subr.msk.bf16.mxu1 (!%p155_p10), %vm396_vm0, %v2179_v1  ;;  %2119 = vmatprep.subr.msk.bf16.mxu0 (!%p155_p10), %vm396_vm0, %v2182_v3  ;;  %s1562_s19 = sshll.u32 (!%p155_p10), %s175_s18, 7  ;;  %s2579_s29 = scalar_lea.hbm (!%p155_p10), %s2636_s3, %s1801_s23 }
  0x12   : > { %s2526_s21 = scalar_lea.vmem (!%p155_p10), [#allocation2], %s1562_s19  ;;  %s2309_s4 = smov (!%p155_p10), [#allocation2]  }
  0x13   : > { %s1474_s26 = sshll.u32 (!%p155_p10), %s2526_s21, 4  ;;  %s2233_s5 = sshll.u32 (!%p155_p10), %s2309_s4, 4  ;;  %s2581_s26 = int_to_ptr.vmem [resolvable:$true] %s1474_s26  ;;  %s2234_s5 = int_to_ptr.vmem [resolvable:$false] %s2233_s5 }
  0x14   : > { %p2236_p1 = scmp.lt.s32.totalorder (!%p155_p10), %s2581_s26, %s2234_s5 }
  0x16   : > { %s179_s30 = scalar_select %p178_p11, %s2299_s15, 1 }
  0x17   : > { %s2587_s15 = scalar_lea.sflag [#allocation3], %s175_s18 }
  0x18   : > { %s2120_s6 = smul.u32 144, %s179_s30  ;;  %s2229_s30 = scalar_lea.vmem %s2581_s26, 2048 }
  0x19   : > { %p2230_p12 = scmp.ne.s32.totalorder %s2581_s26, %s2229_s30 }
  0x1a   : > { %s2407_s9 = scalar_lea.vmem %s2633_s0, %s2120_s6  ;;  %s2235_s6 = scalar_lea.vmem %s2234_s5, 4096 }
  0x1b   : > { %v2180_v5 = vld [vmem:[%s2407_s9 + $0x8] sm:$0xff]   ;;  %v2181_v6 = vld [vmem:[%s2407_s9] sm:$0xff]   ;;  %v2183_v7 = vld [vmem:[%s2407_s9 + $0x10] sm:$0xff]   ;;  %p2231_p13 = pnand %p2230_p12, %p2372_p4  ;;  %p2237_p2 = scmp.lt.s32.totalorder %s2235_s6, %s2229_s30 }
  0x1c   : > { %1950 = vmatprep.mubr.msk.bf16.mxu1 %vm347_vm1, %v2180_v5  ;;  %1984 = vmatprep.mubr.msk.bf16.mxu0 %vm347_vm1, %v2181_v6  ;;  %v2184_v8 = vld [vmem:[%s2407_s9 + $0x8] sm:$0xff]   ;;  %v2185_v10 = vld [vmem:[%s2407_s9 + $0x18] sm:$0xff]   ;;  %v2186_v11 = vld [vmem:[%s2407_s9 + $0x10] sm:$0xff]  }
  0x1d   : > { %1951 = vmatmul.mubr.msk.bf16.vlgmr.msra.gmra.mrb[0].mxu1 %vm347_vm1, %v2183_v7  ;;  %1985 = vmatmul.mubr.msk.bf16.vlgmr.msra.gmra.mrb[0].mxu0 %vm347_vm1, %v2184_v8  ;;  %v2187_v12 = vld [vmem:[%s2407_s9 + $0x20] sm:$0xff]   ;;  %v2188_v13 = vld [vmem:[%s2407_s9 + $0x18] sm:$0xff]   ;;  %v2189_v14 = vld [vmem:[%s2407_s9 + $0x28] sm:$0xff]   ;;  %p2232_p0 = pneg %p2231_p13  ;;  %p2238_p3 = por %p2237_p2, %p2236_p1 }
  0x1e   : > { %2051 = vmatpush3.bf16.msra.mxu1 %v695_v4  ;;  %2017 = vmatpush3.bf16.msra.mxu0 %v1031_v9  ;;  %v2190_v15 = vld [vmem:[%s2407_s9 + $0x20] sm:$0xff]   ;;  %v2191_v16 = vld [vmem:[%s2407_s9 + $0x30] sm:$0xff]   ;;  %v2192_v17 = vld [vmem:[%s2407_s9 + $0x28] sm:$0xff]  }
  0x1f   : > { %1954 = vmatprep.mubr.msk.bf16.mxu1 %vm347_vm1, %v2185_v10  ;;  %1988 = vmatprep.mubr.msk.bf16.mxu0 %vm347_vm1, %v2186_v11  ;;  %v2193_v18 = vld [vmem:[%s2407_s9 + $0x38] sm:$0xff]   ;;  %v2194_v19 = vld [vmem:[%s2407_s9 + $0x30] sm:$0xff]   ;;  %v2195_v20 = vld [vmem:[%s2407_s9 + $0x40] sm:$0xff]   ;;  %p2239_p5 = pnand %p2238_p3, %p2232_p0 }
  0x20   : > { %v2196_v21 = vld [vmem:[%s2407_s9 + $0x38] sm:$0xff]   ;;  %v2197_v22 = vld [vmem:[%s2407_s9 + $0x48] sm:$0xff]   ;;  %v2198_v23 = vld [vmem:[%s2407_s9 + $0x10] sm:$0xff]  }
  0x21   : > { %v2199_v24 = vld [vmem:[%s2407_s9 + $0x50] sm:$0xff]   ;;  %v2200_v25 = vld [vmem:[%s2407_s9 + $0x18] sm:$0xff]   ;;  %v2202_v27 = vld [vmem:[%s2407_s9 + $0x20] sm:$0xff]  }
  0x22   : > { %v2201_v26 = vld [vmem:[%s2407_s9 + $0x58] sm:$0xff]   ;;  %v2203_v28 = vld [vmem:[%s2407_s9 + $0x60] sm:$0xff]   ;;  %v2204_v29 = vld [vmem:[%s2407_s9 + $0x28] sm:$0xff]  }
  0x23   : > { %v2205_v30 = vld [vmem:[%s2407_s9 + $0x68] sm:$0xff]   ;;  %v2206_v31 = vld [vmem:[%s2407_s9 + $0x30] sm:$0xff]   ;;  %v2208_v33 = vld [vmem:[%s2407_s9 + $0x38] sm:$0xff]  }
  0x24   : > { %v2207_v32 = vld [vmem:[%s2407_s9 + $0x70] sm:$0xff]   ;;  %v2209_v34 = vld [vmem:[%s2407_s9 + $0x78] sm:$0xff]   ;;  %v2210_v35 = vld [vmem:[%s2407_s9 + $0x40] sm:$0xff]  }
  0x25   : > { %1955 = vmatmul.mubr.msk.bf16.gmra.mrb[4].mxu1 %vm347_vm1, %v2187_v12  ;;  %1989 = vmatmul.mubr.msk.bf16.gmra.mrb[4].mxu0 %vm347_vm1, %v2188_v13  ;;  %v2211_v36 = vld [vmem:[%s2407_s9 + $0x80] sm:$0xff]   ;;  %v2212_v37 = vld [vmem:[%s2407_s9 + $0x48] sm:$0xff]   ;;  %v2214_v39 = vld [vmem:[%s2407_s9 + $0x50] sm:$0xff]  }
  0x26   : > { %1958 = vmatprep.mubr.msk.bf16.mxu1 %vm347_vm1, %v2189_v14  ;;  %1992 = vmatprep.mubr.msk.bf16.mxu0 %vm347_vm1, %v2190_v15  ;;  %v2213_v38 = vld [vmem:[%s2407_s9 + $0x40] sm:$0xff]   ;;  %v2215_v40 = vld [vmem:[%s2407_s9 + $0x48] sm:$0xff]   ;;  %v2216_v41 = vld [vmem:[%s2407_s9 + $0x58] sm:$0xff]  }
  0x27   : > { %v2217_v42 = vld [vmem:[%s2407_s9 + $0x50] sm:$0xff]   ;;  %v2218_v43 = vld [vmem:[%s2407_s9 + $0x60] sm:$0xff]   ;;  %v2219_v44 = vld [vmem:[%s2407_s9 + $0x58] sm:$0xff]  }
  0x28   : > { %v2220_v45 = vld [vmem:[%s2407_s9 + $0x68] sm:$0xff]   ;;  %v2221_v46 = vld [vmem:[%s2407_s9 + $0x60] sm:$0xff]   ;;  %v2222_v47 = vld [vmem:[%s2407_s9 + $0x70] sm:$0xff]  }
  0x29   : > { %v2223_v48 = vld [vmem:[%s2407_s9 + $0x68] sm:$0xff]   ;;  %v2224_v49 = vld [vmem:[%s2407_s9 + $0x78] sm:$0xff]   ;;  %v2225_v50 = vld [vmem:[%s2407_s9 + $0x70] sm:$0xff]  }
  0x2a   : > { %v2226_v51 = vld [vmem:[%s2407_s9 + $0x80] sm:$0xff]   ;;  %v2227_v52 = vld [vmem:[%s2407_s9 + $0x78] sm:$0xff]   ;;  %v2228_v53 = vld [vmem:[%s2407_s9 + $0x88] sm:$0xff]  }
  0x2b   : > { %v2517_v7 = vld [vmem:[%s2635_s2] ss:$0 sm:$0xff] }
  0x2d   : > { %1959 = vmatmul.mubr.msk.bf16.gmra.mrb[8].mxu1 %vm347_vm1, %v2191_v16  ;;  %1993 = vmatmul.mubr.msk.bf16.gmra.mrb[8].mxu0 %vm347_vm1, %v2192_v17 }
  0x2e   : > { %1962 = vmatprep.mubr.msk.bf16.mxu1 %vm347_vm1, %v2193_v18  ;;  %1996 = vmatprep.mubr.msk.bf16.mxu0 %vm347_vm1, %v2194_v19 }
  0x35   : > { %1963 = vmatmul.mubr.msk.bf16.gmra.mrb[12].mxu1 %vm347_vm1, %v2195_v20  ;;  %1997 = vmatmul.mubr.msk.bf16.gmra.mrb[12].mxu0 %vm347_vm1, %v2196_v21 }
  0x36   : > { %1966 = vmatprep.mubr.msk.bf16.mxu1 %vm347_vm1, %v2197_v22  ;;  %2018 = vmatprep.mubr.msk.bf16.mxu0 %vm347_vm1, %v2198_v23 }
  0x3d   : > { %1967 = vmatmul.mubr.msk.bf16.gmra.mrb[16].mxu1 %vm347_vm1, %v2199_v24  ;;  %2019 = vmatmul.mubr.msk.bf16.vlgmr.msra.gmra.mrb[0].mxu0 %vm347_vm1, %v2200_v25 }
  0x3e   : > { %1970 = vmatprep.mubr.msk.bf16.mxu1 %vm347_vm1, %v2201_v26  ;;  %2022 = vmatprep.mubr.msk.bf16.mxu0 %vm347_vm1, %v2202_v27 }
  0x45   : > { %1971 = vmatmul.mubr.msk.bf16.gmra.mrb[20].mxu1 %vm347_vm1, %v2203_v28  ;;  %2023 = vmatmul.mubr.msk.bf16.gmra.mrb[4].mxu0 %vm347_vm1, %v2204_v29 }
  0x46   : > { %1974 = vmatprep.mubr.msk.bf16.mxu1 %vm347_vm1, %v2205_v30  ;;  %2026 = vmatprep.mubr.msk.bf16.mxu0 %vm347_vm1, %v2206_v31 }
  0x4d   : > { %1975 = vmatmul.mubr.msk.bf16.gmra.mrb[24].mxu1 %vm347_vm1, %v2207_v32  ;;  %2027 = vmatmul.mubr.msk.bf16.gmra.mrb[8].mxu0 %vm347_vm1, %v2208_v33 }
  0x4e   : > { %1978 = vmatprep.mubr.msk.bf16.mxu1 %vm347_vm1, %v2209_v34  ;;  %2030 = vmatprep.mubr.msk.bf16.mxu0 %vm347_vm1, %v2210_v35 }
  0x55   : > { %1979 = vmatmul.mubr.msk.bf16.gmra.mrb[28].mxu1 %vm347_vm1, %v2211_v36  ;;  %2031 = vmatmul.mubr.msk.bf16.gmra.mrb[12].mxu0 %vm347_vm1, %v2212_v37 }
  0x56   : > { %2000 = vmatprep.mubr.msk.bf16.mxu1 %vm347_vm1, %v2213_v38  ;;  %2034 = vmatprep.mubr.msk.bf16.mxu0 %vm347_vm1, %v2214_v39 }
  0x5d   : > { %2001 = vmatmul.mubr.msk.bf16.vlgmr.msra.gmra.mrb[16].mxu1 %vm347_vm1, %v2215_v40  ;;  %2035 = vmatmul.mubr.msk.bf16.gmra.mrb[16].mxu0 %vm347_vm1, %v2216_v41 }
  0x5e   : > { %2004 = vmatprep.mubr.msk.bf16.mxu1 %vm347_vm1, %v2217_v42  ;;  %2038 = vmatprep.mubr.msk.bf16.mxu0 %vm347_vm1, %v2218_v43 }
  0x65   : > { %2005 = vmatmul.mubr.msk.bf16.gmra.mrb[20].mxu1 %vm347_vm1, %v2219_v44  ;;  %2039 = vmatmul.mubr.msk.bf16.gmra.mrb[20].mxu0 %vm347_vm1, %v2220_v45 }
  0x66   : > { %2008 = vmatprep.mubr.msk.bf16.mxu1 %vm347_vm1, %v2221_v46  ;;  %2042 = vmatprep.mubr.msk.bf16.mxu0 %vm347_vm1, %v2222_v47 }
  0x6d   : > { %2009 = vmatmul.mubr.msk.bf16.gmra.mrb[24].mxu1 %vm347_vm1, %v2223_v48  ;;  %2043 = vmatmul.mubr.msk.bf16.gmra.mrb[24].mxu0 %vm347_vm1, %v2224_v49 }
  0x6e   : > { %2012 = vmatprep.mubr.msk.bf16.mxu1 %vm347_vm1, %v2225_v50  ;;  %2046 = vmatprep.mubr.msk.bf16.mxu0 %vm347_vm1, %v2226_v51 }
  0x75   : > { %2013 = vmatmul.mubr.msk.bf16.gmra.mrb[28].mxu1 %vm347_vm1, %v2227_v52  ;;  %2047 = vmatmul.mubr.msk.bf16.gmra.mrb[28].mxu0 %vm347_vm1, %v2228_v53 }
  0xf0   : > { %v1952_v54 = vpop.f32.mrb[0].mxu1 }
  0xf1   : > { %v434_v55 = vpop.f32.mrb[1].mxu1 }
  0xf2   : > { %v1953_v56 = vpop.f32.mrb[2].mxu1 }
  0xf3   : > { %v437_v57 = vpop.f32.mrb[3].mxu1 }
  0xf8   : > { %v1956_v58 = vpop.f32.mrb[4].mxu1 }
  0xf9   : > { %v450_v59 = vpop.f32.mrb[5].mxu1 }
  0xfa   : > { %v1957_v60 = vpop.f32.mrb[6].mxu1 }
  0xfb   : > { %v453_v61 = vpop.f32.mrb[7].mxu1 }
 0x100   : > { %v1960_v62 = vpop.f32.mrb[8].mxu1 }
 0x101   : > { %v466_v63 = vpop.f32.mrb[9].mxu1 }
 0x102   : > { %v1961_v0 = vpop.f32.mrb[10].mxu1 }
 0x103   : > { %v469_v1 = vpop.f32.mrb[11].mxu1 }
 0x108   : > { %v2506_v2 = vpop.f32.mrb[12].mxu1 }
 0x109   : > { %v2508_v3 = vpop.f32.mrb[13].mxu1 }
 0x10a   : > { %v2510_v4 = vpop.f32.mrb[14].mxu1 }
 0x10b   : > { %v2512_v5 = vpop.f32.mrb[15].mxu1 }
 0x110   : > { %v2020_v6 = vpop.f32.mrb[0].mxu0 }
 0x111   : > { %v2052_v8 = vadd.f32 %v2020_v6, %v1952_v54  ;;  %v1067_v9 = vpop.f32.mrb[1].mxu0 }
 0x112   : > { %v2053_v10 = vadd.f32 %v1067_v9, %v434_v55  ;;  %v2021_v11 = vpop.f32.mrb[2].mxu0 }
 0x113   : > { %v1235_v12 = vadd.f32 %v2052_v8, %v2517_v7  ;;  %v2054_v13 = vadd.f32 %v2021_v11, %v1953_v56  ;;  %v1070_v14 = vpop.f32.mrb[3].mxu0 }
 0x114   : > { %v1233_v15 = vadd.f32 %v2053_v10, %v2517_v7  ;;  %v2055_v16 = vadd.f32 %v1070_v14, %v437_v57 }
 0x115   : > { %v1236_v17 = vadd.f32 %v2054_v13, %v2517_v7  ;;  %v1267_v19 = vmax.f32 %v1235_v12, 0.0 }
 0x116   : > { %v1234_v18 = vadd.f32 %v2055_v16, %v2517_v7  ;;  %v1265_v21 = vmax.f32 %v1233_v15, 0.0 }
 0x117   : > { %v1268_v20 = vmax.f32 %v1236_v17, 0.0 }
 0x118   : > { %v1266_v22 = vmax.f32 %v1234_v18, 0.0  ;;  %v2024_v23 = vpop.f32.mrb[4].mxu0 }
 0x119   : > { %v1810_v24 = vpack.c.bf16 %v1268_v20, %v1267_v19  ;;  %v2056_v25 = vadd.f32 %v2024_v23, %v1956_v58  ;;  %v1083_v26 = vpop.f32.mrb[5].mxu0 }
 0x11a   : > { %v1805_v27 = vpack.c.bf16 %v1266_v22, %v1265_v21  ;;  %v2057_v28 = vadd.f32 %v1083_v26, %v450_v59  ;;  %v2025_v29 = vpop.f32.mrb[6].mxu0 }
 0x11b   : > { %1882 = vst [vmem:[%s2526_s21 + $0x8] sm:$0xff] %v1810_v24   ;;  %v1239_v30 = vadd.f32 %v2056_v25, %v2517_v7  ;;  %v2058_v31 = vadd.f32 %v2025_v29, %v1957_v60  ;;  %v1086_v32 = vpop.f32.mrb[7].mxu0 }
 0x11c   : > { %1806 = vst [vmem:[%s2526_s21] sm:$0xff] %v1805_v27   ;;  %v1237_v33 = vadd.f32 %v2057_v28, %v2517_v7  ;;  %v2059_v34 = vadd.f32 %v1086_v32, %v453_v61 }
 0x11d   : > { %v1240_v35 = vadd.f32 %v2058_v31, %v2517_v7  ;;  %v1271_v37 = vmax.f32 %v1239_v30, 0.0 }
 0x11e   : > { %v1238_v36 = vadd.f32 %v2059_v34, %v2517_v7  ;;  %v1269_v39 = vmax.f32 %v1237_v33, 0.0 }
 0x11f   : > { %v1272_v38 = vmax.f32 %v1240_v35, 0.0 }
 0x120   : > { %v1270_v40 = vmax.f32 %v1238_v36, 0.0  ;;  %v2028_v41 = vpop.f32.mrb[8].mxu0 }
 0x121   : > { %v1820_v42 = vpack.c.bf16 %v1272_v38, %v1271_v37  ;;  %v2060_v43 = vadd.f32 %v2028_v41, %v1960_v62  ;;  %v1099_v44 = vpop.f32.mrb[9].mxu0 }
 0x122   : > { %v1815_v45 = vpack.c.bf16 %v1270_v40, %v1269_v39  ;;  %v2061_v46 = vadd.f32 %v1099_v44, %v466_v63  ;;  %v2029_v47 = vpop.f32.mrb[10].mxu0 }
 0x123   : > { %1884 = vst [vmem:[%s2526_s21 + $0x18] sm:$0xff] %v1820_v42   ;;  %v1243_v48 = vadd.f32 %v2060_v43, %v2517_v7  ;;  %v2062_v49 = vadd.f32 %v2029_v47, %v1961_v0  ;;  %v1102_v50 = vpop.f32.mrb[11].mxu0 }
 0x124   : > { %1883 = vst [vmem:[%s2526_s21 + $0x10] sm:$0xff] %v1815_v45   ;;  %v1241_v51 = vadd.f32 %v2061_v46, %v2517_v7  ;;  %v2063_v52 = vadd.f32 %v1102_v50, %v469_v1 }
 0x125   : > { %v1244_v53 = vadd.f32 %v2062_v49, %v2517_v7  ;;  %v1275_v55 = vmax.f32 %v1243_v48, 0.0 }
 0x126   : > { %v1242_v54 = vadd.f32 %v2063_v52, %v2517_v7  ;;  %v1273_v57 = vmax.f32 %v1241_v51, 0.0 }
 0x127   : > { %v1276_v56 = vmax.f32 %v1244_v53, 0.0 }
 0x128   : > { %v1274_v58 = vmax.f32 %v1242_v54, 0.0  ;;  %v2032_v59 = vpop.f32.mrb[12].mxu0 }
 0x129   : > { %v1830_v60 = vpack.c.bf16 %v1276_v56, %v1275_v55  ;;  %v2064_v61 = vadd.f32 %v2032_v59, %v2506_v2  ;;  %v1115_v62 = vpop.f32.mrb[13].mxu0 }
 0x12a   : > { %v1825_v63 = vpack.c.bf16 %v1274_v58, %v1273_v57  ;;  %v2065_v0 = vadd.f32 %v1115_v62, %v2508_v3  ;;  %v2033_v6 = vpop.f32.mrb[14].mxu0 }
 0x12b   : > { %1886 = vst [vmem:[%s2526_s21 + $0x28] sm:$0xff] %v1830_v60   ;;  %v1247_v1 = vadd.f32 %v2064_v61, %v2517_v7  ;;  %v2066_v8 = vadd.f32 %v2033_v6, %v2510_v4  ;;  %v1118_v9 = vpop.f32.mrb[15].mxu0 }
 0x12c   : > { %1885 = vst [vmem:[%s2526_s21 + $0x20] sm:$0xff] %v1825_v63   ;;  %v1245_v10 = vadd.f32 %v2065_v0, %v2517_v7  ;;  %v2067_v11 = vadd.f32 %v1118_v9, %v2512_v5 }
 0x12d   : > { %v1248_v12 = vadd.f32 %v2066_v8, %v2517_v7  ;;  %v1279_v13 = vmax.f32 %v1247_v1, 0.0 }
 0x12e   : > { %v1246_v2 = vadd.f32 %v2067_v11, %v2517_v7  ;;  %v1277_v15 = vmax.f32 %v1245_v10, 0.0 }
 0x12f   : > { %v1280_v14 = vmax.f32 %v1248_v12, 0.0 }
 0x130   : > { %v2002_v3 = vpop.f32.mrb[16].mxu1  ;;  %v1278_v16 = vmax.f32 %v1246_v2, 0.0  ;;  %v2036_v17 = vpop.f32.mrb[16].mxu0 }
 0x131   : > { %v795_v18 = vpop.f32.mrb[17].mxu1  ;;  %v1840_v4 = vpack.c.bf16 %v1280_v14, %v1279_v13  ;;  %v2068_v19 = vadd.f32 %v2036_v17, %v2002_v3  ;;  %v1131_v20 = vpop.f32.mrb[17].mxu0 }
 0x132   : > { %v2003_v21 = vpop.f32.mrb[18].mxu1  ;;  %v1835_v22 = vpack.c.bf16 %v1278_v16, %v1277_v15  ;;  %v2069_v23 = vadd.f32 %v1131_v20, %v795_v18  ;;  %v2037_v5 = vpop.f32.mrb[18].mxu0 }
 0x133   : > { %v798_v24 = vpop.f32.mrb[19].mxu1  ;;  %1888 = vst [vmem:[%s2526_s21 + $0x38] sm:$0xff] %v1840_v4   ;;  %v1251_v25 = vadd.f32 %v2068_v19, %v2517_v7  ;;  %v2070_v26 = vadd.f32 %v2037_v5, %v2003_v21  ;;  %v1134_v27 = vpop.f32.mrb[19].mxu0 }
 0x134   : > { %1887 = vst [vmem:[%s2526_s21 + $0x30] sm:$0xff] %v1835_v22   ;;  %v1249_v28 = vadd.f32 %v2069_v23, %v2517_v7  ;;  %v2071_v29 = vadd.f32 %v1134_v27, %v798_v24 }
 0x135   : > { %v1252_v30 = vadd.f32 %v2070_v26, %v2517_v7  ;;  %v1283_v32 = vmax.f32 %v1251_v25, 0.0 }
 0x136   : > { %v1250_v31 = vadd.f32 %v2071_v29, %v2517_v7  ;;  %v1281_v35 = vmax.f32 %v1249_v28, 0.0 }
 0x137   : > { %v1284_v33 = vmax.f32 %v1252_v30, 0.0 }
 0x138   : > { %v2006_v34 = vpop.f32.mrb[20].mxu1  ;;  %v1282_v36 = vmax.f32 %v1250_v31, 0.0  ;;  %v2040_v37 = vpop.f32.mrb[20].mxu0 }
 0x139   : > { %v811_v38 = vpop.f32.mrb[21].mxu1  ;;  %v1850_v39 = vpack.c.bf16 %v1284_v33, %v1283_v32  ;;  %v2072_v40 = vadd.f32 %v2040_v37, %v2006_v34  ;;  %v1147_v41 = vpop.f32.mrb[21].mxu0 }
 0x13a   : > { %v2007_v42 = vpop.f32.mrb[22].mxu1  ;;  %v1845_v43 = vpack.c.bf16 %v1282_v36, %v1281_v35  ;;  %v2073_v44 = vadd.f32 %v1147_v41, %v811_v38  ;;  %v2041_v45 = vpop.f32.mrb[22].mxu0 }
 0x13b   : > { %v814_v46 = vpop.f32.mrb[23].mxu1  ;;  %1890 = vst [vmem:[%s2526_s21 + $0x48] sm:$0xff] %v1850_v39   ;;  %v1255_v47 = vadd.f32 %v2072_v40, %v2517_v7  ;;  %v2074_v48 = vadd.f32 %v2041_v45, %v2007_v42  ;;  %v1150_v49 = vpop.f32.mrb[23].mxu0 }
 0x13c   : > { %1889 = vst [vmem:[%s2526_s21 + $0x40] sm:$0xff] %v1845_v43   ;;  %v1253_v50 = vadd.f32 %v2073_v44, %v2517_v7  ;;  %v2075_v51 = vadd.f32 %v1150_v49, %v814_v46 }
 0x13d   : > { %v1256_v52 = vadd.f32 %v2074_v48, %v2517_v7  ;;  %v1287_v54 = vmax.f32 %v1255_v47, 0.0 }
 0x13e   : > { %v1254_v53 = vadd.f32 %v2075_v51, %v2517_v7  ;;  %v1285_v57 = vmax.f32 %v1253_v50, 0.0 }
 0x13f   : > { %v1288_v55 = vmax.f32 %v1256_v52, 0.0 }
 0x140   : > { %v2010_v56 = vpop.f32.mrb[24].mxu1  ;;  %v1286_v58 = vmax.f32 %v1254_v53, 0.0  ;;  %v2044_v59 = vpop.f32.mrb[24].mxu0 }
 0x141   : > { %v827_v60 = vpop.f32.mrb[25].mxu1  ;;  %v1860_v61 = vpack.c.bf16 %v1288_v55, %v1287_v54  ;;  %v2076_v62 = vadd.f32 %v2044_v59, %v2010_v56  ;;  %v1163_v63 = vpop.f32.mrb[25].mxu0 }
 0x142   : > { %v2011_v0 = vpop.f32.mrb[26].mxu1  ;;  %v1855_v6 = vpack.c.bf16 %v1286_v58, %v1285_v57  ;;  %v2077_v1 = vadd.f32 %v1163_v63, %v827_v60  ;;  %v2045_v8 = vpop.f32.mrb[26].mxu0 }
 0x143   : > { %v830_v9 = vpop.f32.mrb[27].mxu1  ;;  %1892 = vst [vmem:[%s2526_s21 + $0x58] sm:$0xff] %v1860_v61   ;;  %v1259_v10 = vadd.f32 %v2076_v62, %v2517_v7  ;;  %v2078_v11 = vadd.f32 %v2045_v8, %v2011_v0  ;;  %v1166_v12 = vpop.f32.mrb[27].mxu0 }
 0x144   : > { %1891 = vst [vmem:[%s2526_s21 + $0x50] sm:$0xff] %v1855_v6   ;;  %v1257_v2 = vadd.f32 %v2077_v1, %v2517_v7  ;;  %v2079_v13 = vadd.f32 %v1166_v12, %v830_v9 }
 0x145   : > { %v1260_v14 = vadd.f32 %v2078_v11, %v2517_v7  ;;  %v1291_v15 = vmax.f32 %v1259_v10, 0.0 }
 0x146   : > { %v1258_v3 = vadd.f32 %v2079_v13, %v2517_v7  ;;  %v1289_v18 = vmax.f32 %v1257_v2, 0.0 }
 0x147   : > { %v1292_v16 = vmax.f32 %v1260_v14, 0.0 }
 0x148   : > { %v2014_v17 = vpop.f32.mrb[28].mxu1  ;;  %v1290_v4 = vmax.f32 %v1258_v3, 0.0  ;;  %v2048_v19 = vpop.f32.mrb[28].mxu0 }
 0x149   : > { %v843_v20 = vpop.f32.mrb[29].mxu1  ;;  %v1870_v21 = vpack.c.bf16 %v1292_v16, %v1291_v15  ;;  %v2080_v22 = vadd.f32 %v2048_v19, %v2014_v17  ;;  %v1179_v23 = vpop.f32.mrb[29].mxu0 }
 0x14a   : > { %v2015_v5 = vpop.f32.mrb[30].mxu1  ;;  %v1865_v24 = vpack.c.bf16 %v1290_v4, %v1289_v18  ;;  %v2081_v25 = vadd.f32 %v1179_v23, %v843_v20  ;;  %v2049_v26 = vpop.f32.mrb[30].mxu0 }
 0x14b   : > { %v846_v27 = vpop.f32.mrb[31].mxu1  ;;  %1894 = vst [vmem:[%s2526_s21 + $0x68] sm:$0xff] %v1870_v21   ;;  %v1263_v28 = vadd.f32 %v2080_v22, %v2517_v7  ;;  %v2082_v29 = vadd.f32 %v2049_v26, %v2015_v5  ;;  %v1182_v30 = vpop.f32.mrb[31].mxu0 }
 0x14c   : > { %1893 = vst [vmem:[%s2526_s21 + $0x60] sm:$0xff] %v1865_v24   ;;  %v1261_v31 = vadd.f32 %v2081_v25, %v2517_v7  ;;  %v2083_v32 = vadd.f32 %v1182_v30, %v846_v27 }
 0x14d   : > { %v1264_v33 = vadd.f32 %v2082_v29, %v2517_v7  ;;  %v1295_v35 = vmax.f32 %v1263_v28, 0.0 }
 0x14e   : > { %v1262_v34 = vadd.f32 %v2083_v32, %v2517_v7  ;;  %v1293_v37 = vmax.f32 %v1261_v31, 0.0 }
 0x14f   : > { %v1296_v36 = vmax.f32 %v1264_v33, 0.0 }
 0x150   : > { %v1294_v38 = vmax.f32 %v1262_v34, 0.0 }
 0x151   : > { %v1880_v39 = vpack.c.bf16 %v1296_v36, %v1295_v35 }
 0x152   : > { %v1875_v40 = vpack.c.bf16 %v1294_v38, %v1293_v37 }
 0x153   : > { %1896 = vst [vmem:[%s2526_s21 + $0x78] sm:$0xff] %v1880_v39  }
 0x154   : > { %1895 = vst [vmem:[%s2526_s21 + $0x70] sm:$0xff] %v1875_v40  }
 0x155   : > { %2242 = shalt.err (!%p2239_p5)
}
 0x156   : > { %s2243_s7 = scalar_lea.hbm %s2579_s29, 2048  ;;  %s2247_s10 = scalar_lea.hbm %s2636_s3, 4096 }
 0x157   : > { %p2244_p6 = scmp.ne.s32.totalorder %s2579_s29, %s2243_s7  ;;  %p2248_p10 = scmp.lt.u32.totalorder %s2579_s29, %s2636_s3 }
 0x158   : > { %p2249_p11 = scmp.lt.u32.totalorder %s2247_s10, %s2243_s7  ;;  %p2251_p13 = scmp.lt.u32.totalorder %s2243_s7, %s2579_s29 }
 0x159   : > { %p2245_p7 = pnand %p2244_p6, %p2372_p4 }
 0x15a   : > { %p2250_p12 = por %p2249_p11, %p2248_p10 }
 0x15b   : > { %p2246_p9 = pneg %p2245_p7 }
 0x15c   : > { %p2252_p0 = por %p2251_p13, %p2250_p12 }
 0x15e   : > { %p2253_p1 = pnand %p2252_p0, %p2246_p9 }
 0x160   : > { %2256 = shalt.err (!%p2253_p1)
}
 0x161   : > { %s2310_s19 = smov 64   ;;  %s2311_s21 = smov 4  }
 0x162   : > { %2121 = dma.vmem_to_hbm [thread:$0]  (%p2372_p4), %s2581_s26, 2048, %s2579_s29, %s2587_s15, %s2310_s19, %s2310_s19, %s2311_s21  }
 0x163 PF: > { %p2127_p2 = scmp.ge.s32.totalorder %s2307_s17, 2  ;;  %s1489_s23 = sand.u32 1, %s2287_s12  }
 0x164   : > { %s1490_s27 = scalar_lea.sflag [#allocation3], %s1489_s23 }
 0x165   : > { %p2124_p3 = pnand %p2127_p2, %p2379_p8 }
 0x167   : > { %2282 = dma.done.wait (!%p2124_p3), %s1490_s27, 2048  }
 0x168   : > { %2284 = vsyncadd (!%p2124_p3), %s1490_s27, 4294965248  ;;  %s16_s17 = sadd.s32 1, %s2307_s17   ;;  %s2639_s12 = smov %s2291_s13 }
 0x169   : > { %p13_p5 = scmp.ge.s32.totalorder %s16_s17, 4   ;;  %s2640_s13 = smov %s2295_s14 }
 0x16a   : > { %s2641_s14 = smov %s2385_s25  ;;  %s2642_s15 = smov %s2303_s16 }
 0x16b   : > { %s2643_s16 = smov %s2645_s20  ;;  %15 = sbr.rel (!%p13_p5) target bundleno = 4 (0x4), region = 72 }
 0x172   :  { %1495 = vsyncpa [#allocation3], 1 }
 0x173   :  { %1497 = vsyncpa [#allocation3 + $0x1], 1 }

</bundles_post_ra>
